<compile_context>
chip_gen: v7x
topology: tpu7x:2x2x1
jax: 0.10.0
libtpu: 0.0.40
codegen_flags: <defaults>
</compile_context>

<pallas_src>
import functools

import jax
import jax.numpy as jnp
from jax.experimental import pallas as pl
from jax.experimental.pallas import tpu as pltpu

_LANE = 128


def _round_up(x: int, m: int) -> int:
    return (x + m - 1) // m * m


def _vmem_budget_bytes() -> int:
    """Per-kernel scoped-VMEM budget derived from the chip's physical VMEM."""
    cap = 128 * 1024 * 1024  # v5e/v6e physical VMEM per TensorCore
    try:
        info = pltpu.get_tpu_info()
        cap = int(getattr(info, "vmem_capacity_bytes", cap))
    except Exception:
        pass
    # Never ask for more than half of physical VMEM:
    #   v5e/v6e (128 MiB) -> 64 MiB,   v7x (64 MiB) -> 32 MiB.
    return min(64 * 1024 * 1024, cap // 2)


def _pick_tile_d(d_pad: int, k: int, n: int, itemsize: int, vmem_budget: int) -> int:
    """Largest lane-dense D tile whose double-buffered footprint fits VMEM.

    Per grid step the pipeline holds ~2x (double buffering) of
    (buf tile: k rows) + (feat tile: n rows) + (out tile: k rows), tile_d wide.
    When d_pad >= 256 prefer a tile <= d_pad // 2 so grid >= 2 and the
    "parallel" axis can use both v7x TensorCores (harmless on v5e/v6e).
    """
    assert d_pad % _LANE == 0
    per_col_bytes = 2 * (2 * k + n) * itemsize
    max_tile = max(_LANE, (int(vmem_budget * 0.9) // per_col_bytes) // _LANE * _LANE)
    m = d_pad // _LANE
    cands = [_LANE * f for f in range(1, m + 1) if m % f == 0]  # 128-multiples dividing d_pad
    fitting = [t for t in cands if t <= min(max_tile, 2048)] or [_LANE]
    split = [t for t in fitting if t <= d_pad // 2]
    if d_pad >= 2 * _LANE and split:
        return max(split)
    return max(fitting)
    # TODO(synk): for extremely large K even a 128-wide tile may exceed VMEM;
    # that regime would need row-blocking of the shift as well.


@functools.lru_cache(maxsize=None)
def _build_shift_append(k: int, n: int, d_pad: int, dtype_name: str):
    """jit-cached pallas_call computing concat(buf, feat, 0)[-k:] for 0 < n < k."""
    dtype = jnp.dtype(dtype_name)
    itemsize = dtype.itemsize
    budget = _vmem_budget_bytes()
    tile_d = _pick_tile_d(d_pad, k, n, itemsize, budget)
    grid = (d_pad // tile_d,)

    def kernel(buf_ref, feat_ref, out_ref):
        # Row shift + append for one lane-dense D tile.
        # TODO(synk): the first n rows of buf are dead; skipping their DMA needs
        # an element-offset (pl.Element) row window or an HBM->HBM DMA
        # formulation -- left out to keep lowering simple on all generations.
        out_ref[0 : k - n, :] = buf_ref[n:k, :]
        out_ref[k - n : k, :] = feat_ref[...]

    cost = pl.CostEstimate(
        flops=0,
        transcendentals=0,
        bytes_accessed=(2 * k + n) * d_pad * itemsize,  # read buf+feat, write out
    )

    call = pl.pallas_call(
        kernel,
        grid=grid,
        in_specs=[
            pl.BlockSpec((k, tile_d), lambda j: (0, j)),  # buf tile
            pl.BlockSpec((n, tile_d), lambda j: (0, j)),  # feat tile
        ],
        out_specs=pl.BlockSpec((k, tile_d), lambda j: (0, j)),
        out_shape=jax.ShapeDtypeStruct((k, d_pad), dtype),
        compiler_params=pltpu.CompilerParams(
            dimension_semantics=("parallel",),  # every D tile independent -> megacore OK
            vmem_limit_bytes=budget,
        ),
        cost_estimate=cost,
    )
    return jax.jit(call)


def buffer_update(buf, feat):
    """Pallas implementation of concat(buf, feat, 0)[-K:] (static shapes, 0 < N < K)."""
    k, d_pad = buf.shape
    n, d2 = feat.shape
    assert d_pad == d2, "feature dim mismatch"
    assert buf.dtype == feat.dtype, "dtype mismatch"
    assert 0 < n < k
    fn = _build_shift_append(k, n, d_pad, jnp.dtype(buf.dtype).name)
    return fn(buf, feat)


class Buffer:
    """Functional-state JAX/Pallas port of the PyTorch `Buffer` module."""

    def __init__(self, last_k):
        self.last_k = int(last_k)
        self._storage = None  # fixed (last_k, d_pad) backing array, valid rows tail-aligned
        self._d = None        # true feature width (padding sliced off on return)
        self._count = 0       # number of valid trailing rows

    def __call__(self, features):
        return self.forward(features)

    def forward(self, features):
        features = jnp.asarray(features)
        if features.ndim != 2:
            raise ValueError("expected features of shape (N, D)")
        n, d = features.shape
        k = self.last_k

        if self._storage is None:
            # Lazy init (torch starts from an empty tensor); dtype follows the features.
            self._d = d
            d_pad = _round_up(max(d, 1), _LANE)
            self._storage = jnp.zeros((k, d_pad), dtype=features.dtype)
        if d != self._d:
            raise ValueError("feature dim changed between calls")
        if features.dtype != self._storage.dtype:
            raise ValueError("feature dtype changed between calls")
        d_pad = self._storage.shape[1]

        if n == 0:
            return self._storage[k - self._count :, :d]

        if n >= k:
            # Fast path: new features alone fill/overflow the buffer; the old
            # storage is dead so no Pallas call (no buf read) is needed.
            tail = jax.lax.stop_gradient(features[n - k :, :])          # (k, d)
            self._storage = tail if d == d_pad else jnp.pad(tail, ((0, 0), (0, d_pad - d)))
            self._count = k
            return tail

        feat_p = features if d == d_pad else jnp.pad(features, ((0, 0), (0, d_pad - d)))
        new_storage = buffer_update(self._storage, feat_p)
        new_storage = jax.lax.stop_gradient(new_storage)  # .detach()
        self._storage = new_storage
        self._count = min(self._count + n, k)

        if self._count == k and d == d_pad:
            return new_storage  # zero-copy steady state
        # Valid rows are tail-aligned; `self._count` is a concrete Python int, so
        # this variable-length view happens outside any traced/Pallas code.
        return new_storage[k - self._count :, :d]


if __name__ == "__main__":
    key = jax.random.PRNGKey(0)

    configs = [
        # (last_k, D, per-step feature counts) — growth, fill, and overflow cases.
        (8, 32, (2, 3, 6, 8, 11)),     # tiny D (padded to 128), grid=(1,)
        (16, 256, (4, 12, 20, 7)),     # lane-dense D, two 128-wide tiles, fast path hit
    ]

    for last_k, D, sizes in configs:
        module = Buffer(last_k)
        # Torch-equivalent reference: a dynamically growing buffer.
        ref_buf = jnp.zeros((0, D), dtype=jnp.float32)
        for step, n in enumerate(sizes):
            key, sub = jax.random.split(key)
            feats = jax.random.normal(sub, (n, D), dtype=jnp.float32)

            out = jax.block_until_ready(module(feats))

            ref_buf = jnp.concatenate([ref_buf, feats], axis=0)[-last_k:]
            assert out.shape == ref_buf.shape, (last_k, D, step, out.shape, ref_buf.shape)
            assert jnp.array_equal(out, ref_buf), f"value mismatch k={last_k} D={D} step={step}"

    print("KERNEL_OK")
</pallas_src>

<mosaic_0001>
module attributes {stable_mosaic.version = 11 : i64} {
  func.func @kernel(%arg0: i32, %arg1: memref<8x128xf32, #tpu.memory_space<vmem>>, %arg2: memref<2x128xf32, #tpu.memory_space<vmem>>, %arg3: memref<8x128xf32, #tpu.memory_space<vmem>>) attributes {dimension_semantics = [#tpu.dimension_semantics<parallel>], iteration_bounds = array<i64: 1>, scalar_prefetch = 0 : i64, scratch_operands = 0 : i64, tpu.core_type = #tpu.core_type<tc>, window_params = [{transform_indices = @transform_0, window_bounds = array<i64: 8, 128>}, {transform_indices = @transform_1, window_bounds = array<i64: 2, 128>}, {transform_indices = @transform_2, window_bounds = array<i64: 8, 128>}]} {
    %c2 = arith.constant 2 : index
    %c0 = arith.constant 0 : index
    %0 = vector.load %arg1[%c2, %c0] : memref<8x128xf32, #tpu.memory_space<vmem>>, vector<6x128xf32>
    %c0_0 = arith.constant 0 : index
    %c0_1 = arith.constant 0 : index
    %1 = vector.load %arg3[%c0_0, %c0_1] : memref<8x128xf32, #tpu.memory_space<vmem>>, vector<6x128xf32>
    tpu.vector_store %arg3[%c0_0, %c0_1], %0 {strides = array<i32>} : memref<8x128xf32, #tpu.memory_space<vmem>>, vector<6x128xf32>,
    %c0_2 = arith.constant 0 : index
    %c0_3 = arith.constant 0 : index
    %2 = vector.load %arg2[%c0_2, %c0_3] : memref<2x128xf32, #tpu.memory_space<vmem>>, vector<2x128xf32>
    %c6 = arith.constant 6 : index
    %c0_4 = arith.constant 0 : index
    %3 = vector.load %arg3[%c6, %c0_4] : memref<8x128xf32, #tpu.memory_space<vmem>>, vector<2x128xf32>
    tpu.vector_store %arg3[%c6, %c0_4], %2 {strides = array<i32>} : memref<8x128xf32, #tpu.memory_space<vmem>>, vector<2x128xf32>,
    return
  }
  func.func @transform_0(%arg0: i32) -> (i32, i32) {
    %c0_i32 = arith.constant 0 : i32
    %c0_i32_0 = arith.constant 0 : i32
    return %c0_i32, %arg0 : i32, i32
  }
  func.func @transform_1(%arg0: i32) -> (i32, i32) {
    %c0_i32 = arith.constant 0 : i32
    %c0_i32_0 = arith.constant 0 : i32
    return %c0_i32, %arg0 : i32, i32
  }
  func.func @transform_2(%arg0: i32) -> (i32, i32) {
    %c0_i32 = arith.constant 0 : i32
    %c0_i32_0 = arith.constant 0 : i32
    return %c0_i32, %arg0 : i32, i32
  }
}

</mosaic_0001>

<bundles_post_ra>
// kernel: tpu_custom_call.1
= control target key start
LH: loop header
LB: loop body
LE: loop exit
PB: predicated region body
PF: predicated region fallthrough
CT: control target
= control target key end

     0   :  { %7 = vsyncpa [#allocation3], 0  ;;  %s185_s0 = inlined_call_operand.hbm [shape: f32[8,128], index: 0, kind: input, shape index: {}]   ;;  %s186_s1 = inlined_call_operand.hbm [shape: f32[2,128], index: 1, kind: input, shape index: {}]   ;;  %s187_s2 = inlined_call_operand.hbm [shape: f32[8,128], index: 2, kind: output, shape index: {}]  }
   0x1   :  { %8 = vsyncpa [#allocation6], 0 }
   0x2   :  { %9 = vsyncpa [#allocation4], 0  ;;  %s131_s9 = smov [#allocation2]   ;;  %s132_s11 = smov [#allocation5]  }
   0x3   :  { %s16_s10 = sshll.u32 %s131_s9, 4  ;;  %s26_s12 = sshll.u32 %s132_s11, 4  ;;  %s17_s10 = int_to_ptr.vmem [resolvable:$true] %s16_s10  ;;  %s27_s12 = int_to_ptr.vmem [resolvable:$true] %s26_s12 }
   0x4   :  { %s59_s15 = scalar_lea.hbm %s185_s0, 128 }
   0x5   :  { %p60_p0 = scmp.ne.s32.totalorder %s185_s0, %s59_s15  ;;  %p63_p1 = scmp.lt.u32.totalorder %s59_s15, %s185_s0 }
   0x7   :  { %p65_p2 = pnand %p63_p1, %p60_p0 }
   0x9   :  { %68 = shalt.err (!%p65_p2)
}
   0xa   :  { %s69_s20 = scalar_lea.vmem %s17_s10, 128  ;;  %p74_p4 = scmp.lt.s32.totalorder %s17_s10, %s17_s10 }
   0xb   :  { %p70_p3 = scmp.ne.s32.totalorder %s17_s10, %s69_s20  ;;  %p75_p5 = scmp.lt.s32.totalorder %s69_s20, %s69_s20 }
   0xd   :  { %p76_p6 = por %p75_p5, %p74_p4 }
   0xf   :  { %p77_p7 = pnand %p76_p6, %p70_p3 }
  0x11   :  { %80 = shalt.err (!%p77_p7)
}
  0x12   :  { %19 = dma.hbm_to_vmem [thread:$0]  %s185_s0, 128, %s17_s10, [#allocation3]  }
  0x13   :  { %s81_s25 = scalar_lea.hbm %s186_s1, 32 }
  0x14   :  { %p82_p8 = scmp.ne.s32.totalorder %s186_s1, %s81_s25  ;;  %p85_p9 = scmp.lt.u32.totalorder %s81_s25, %s186_s1 }
  0x16   :  { %p87_p10 = pnand %p85_p9, %p82_p8 }
  0x18   :  { %90 = shalt.err (!%p87_p10)
}
  0x19   :  { %s91_s30 = scalar_lea.vmem %s27_s12, 32  ;;  %p96_p12 = scmp.lt.s32.totalorder %s27_s12, %s27_s12 }
  0x1a   :  { %p92_p11 = scmp.ne.s32.totalorder %s27_s12, %s91_s30  ;;  %p97_p13 = scmp.lt.s32.totalorder %s91_s30, %s91_s30 }
  0x1c   :  { %p98_p0 = por %p97_p13, %p96_p12 }
  0x1e   :  { %p99_p1 = pnand %p98_p0, %p92_p11 }
  0x20   :  { %102 = shalt.err (!%p99_p1)
}
  0x21   :  { %29 = dma.hbm_to_vmem [thread:$0]  %s186_s1, 32, %s27_s12, [#allocation6]  }
  0x22   :  { %125 = dma.done.wait [#allocation3], 128  }
  0x23   :  { %126 = vsyncadd [#allocation3], 4294967168 }
  0x24   :  { %127 = dma.done.wait [#allocation6], 32  }
  0x25   :  { %128 = vsyncadd [#allocation6], 4294967264  ;;  %s133_s4 = smov [#allocation7]   ;;  %v36_v0 = vld [vmem:[#allocation2 + $0x2] sm:$0x3f] }
  0x26   :  { %s46_s5 = sshll.u32 %s133_s4, 4  ;;  %v38_v1 = vld [vmem:[#allocation5] sm:$0x3]  ;;  %37 = vst [vmem:[#allocation7] sm:$0x3f] %v36_v0  ;;  %s47_s5 = int_to_ptr.vmem [resolvable:$true] %s46_s5 }
  0x27   :  { %39 = vst [vmem:[#allocation7 + $0x6] sm:$0x3] %v38_v1  ;;  %s103_s6 = scalar_lea.vmem %s47_s5, 128  ;;  %p108_p3 = scmp.lt.s32.totalorder %s47_s5, %s47_s5 }
  0x28   :  { %p104_p2 = scmp.ne.s32.totalorder %s47_s5, %s103_s6  ;;  %p109_p4 = scmp.lt.s32.totalorder %s103_s6, %s103_s6 }
  0x2a   :  { %p110_p5 = por %p109_p4, %p108_p3 }
  0x2c   :  { %p111_p6 = pnand %p110_p5, %p104_p2 }
  0x2e   :  { %114 = shalt.err (!%p111_p6)
}
  0x2f   :  { %s115_s8 = scalar_lea.hbm %s187_s2, 128 }
  0x30   :  { %p116_p7 = scmp.ne.s32.totalorder %s187_s2, %s115_s8  ;;  %p119_p8 = scmp.lt.u32.totalorder %s115_s8, %s187_s2 }
  0x32   :  { %p121_p9 = pnand %p119_p8, %p116_p7 }
  0x34   :  { %124 = shalt.err (!%p121_p9)
}
  0x35   :  { %49 = dma.vmem_to_hbm [thread:$0]  %s47_s5, 128, %s187_s2, [#allocation4]  }
  0x36   :  { %129 = dma.done.wait [#allocation4], 128  }
  0x37   :  { %130 = vsyncadd [#allocation4], 4294967168 }
  0x38   :  { %53 = vsyncpa [#allocation3], 1 }
  0x39   :  { %54 = vsyncpa [#allocation6], 1 }
  0x3a   :  { %55 = vsyncpa [#allocation4], 1 }

</bundles_post_ra>
